<compile_context>
chip_gen: v6e
topology: v6e:2x2x1
jax: 0.10.0
libtpu: 0.0.40
codegen_flags: <defaults>
</compile_context>

<pallas_src>
import functools

import jax
import jax.numpy as jnp
from jax.experimental import pallas as pl
from jax.experimental.pallas import tpu as pltpu


def _round_up(x, m):
    return ((x + m - 1) // m) * m


def _cdiv(a, b):
    return -(-a // b)


def _protonet_kernel(avg_ref, sup_ref, qry_ref, out_ref, *, inv_n):
    """One block of EB episodes per grid step.

    avg_ref : (K_LANE, S_PAD)      0/1 class-membership matrix (resident input)
    sup_ref : (EB, S_PAD, D_PAD)   support rows (zero padded)
    qry_ref : (EB, Q_PAD, D_PAD)   query rows   (zero padded)
    out_ref : (EB, Q_PAD, K_LANE)  -||q - proto_c||_2 ; lanes >= k_way are padding
    """
    eb, s_pad, d_pad = sup_ref.shape
    k_lane = avg_ref.shape[0]

    sup = sup_ref[...]                                    # input dtype (f32 / bf16)
    qry = qry_ref[...]
    avg = jnp.broadcast_to(avg_ref[...][None, :, :], (eb, k_lane, s_pad))

    # Class prototypes: 0/1 sum matrix on the MXU with f32 accumulation, then the
    # exact 1/n scale on the f32 result.  Padded classes / rows stay zero.
    proto_f32 = jnp.einsum('ecs,esd->ecd', avg, sup,
                           preferred_element_type=jnp.float32) * jnp.float32(inv_n)
    proto = proto_f32.astype(sup.dtype)                   # MXU operand in input dtype

    # q . p  (batched NT contraction, flash-attention pattern) -> (EB, Q_PAD, K_LANE)
    qp = jnp.einsum('eqd,ecd->eqc', qry, proto,
                    preferred_element_type=jnp.float32)

    # ||q||^2 per query row, in f32.
    qf = qry.astype(jnp.float32)
    q2 = jnp.sum(qf * qf, axis=-1, keepdims=True)         # (EB, Q_PAD, 1)

    # ||p||^2 directly as an (EB, 1, K_LANE) row: ones-row matmul with the same
    # einsum shape as qp (no transpose of the prototype tile).
    proto_sq = proto * proto
    ones_row = jnp.ones((eb, 1, d_pad), dtype=proto.dtype)
    p2 = jnp.einsum('eqd,ecd->eqc', ones_row, proto_sq,
                    preferred_element_type=jnp.float32)   # (EB, 1, K_LANE)

    # ||q - p||^2 = ||q||^2 + ||p||^2 - 2 q.p ; clamp (cancellation) before sqrt.
    d2 = jnp.maximum(q2 + p2 - 2.0 * qp, 0.0)
    out_ref[...] = (-jnp.sqrt(d2)).astype(out_ref.dtype)


def protonet_forward(feat, k_way, n_shot, query):
    """JAX/Pallas equivalent of protonet(k_way, n_shot, query).forward(feat).

    feat may be (rows, D) for a single episode (matching the PyTorch module) or
    (E, rows, D) for a batch of episodes processed under one pallas_call grid.
    """
    single = feat.ndim == 2
    if single:
        feat = feat[None]
    E, rows, D = feat.shape

    n_support = k_way * n_shot
    n_query = rows - n_support
    assert n_query == k_way * query, "feat rows must be k*n support + k*query queries"

    dtype = feat.dtype
    itemsize = jnp.dtype(dtype).itemsize
    sub = 8 * max(1, 4 // itemsize)            # sublane multiple: 8 (f32), 16 (bf16)

    D_PAD = _round_up(D, 128)                  # lane-dense feature dim
    K_LANE = _round_up(k_way, 128)             # lane-dense class dim (unmasked stores)
    S_PAD = _round_up(n_support, sub)          # aligned support slab
    Q_PAD = _round_up(n_query, sub)            # aligned query slab

    # ---- choose EB (episodes per grid step) from VMEM capacity ----------------
    per_ep_in = (S_PAD + Q_PAD) * D_PAD * itemsize
    per_ep_out = Q_PAD * K_LANE * itemsize
    per_ep_tmp = (K_LANE * D_PAD * (4 + 2 * itemsize)   # proto_f32 + proto + proto_sq
                  + Q_PAD * D_PAD * 4                   # qry upcast for ||q||^2
                  + Q_PAD * K_LANE * 4 * 3)             # qp / d2 / result f32 temps
    per_ep_bytes = 2 * per_ep_in + 2 * per_ep_out + per_ep_tmp
    avg_bytes = K_LANE * S_PAD * itemsize

    try:
        vmem_cap = int(pltpu.get_tpu_info().vmem_capacity_bytes)
    except Exception:
        vmem_cap = 64 * 1024 * 1024            # v7x-safe lower bound
    budget = int(vmem_cap * 0.45)              # headroom for compiler scratch

    eb_fit = max(1, (budget - avg_bytes) // per_ep_bytes)
    eb_dma = max(1, (512 * 1024) // per_ep_in)  # target >= ~512 KiB of input per step
    EB = int(min(eb_fit, eb_dma, max(E, 1)))
    if E >= 2:                                 # keep grid length >= 2 (v7x: 2 TCs)
        EB = max(1, min(EB, _cdiv(E, 2)))
    E_PAD = _round_up(E, EB)
    grid = (E_PAD // EB,)

    # ---- wrapper-side layout: aligned, zero-padded support / query slabs ------
    sup = jnp.pad(feat[:, :n_support, :],
                  ((0, E_PAD - E), (0, S_PAD - n_support), (0, D_PAD - D)))
    qry = jnp.pad(feat[:, n_support:, :],
                  ((0, E_PAD - E), (0, Q_PAD - n_query), (0, D_PAD - D)))

    # 0/1 class-membership matrix (exact in any dtype); resident input.
    col_cls = jnp.arange(S_PAD, dtype=jnp.int32) // n_shot
    row_cls = jnp.arange(K_LANE, dtype=jnp.int32)
    sum_mat = (row_cls[:, None] == col_cls[None, :]).astype(dtype)   # (K_LANE, S_PAD)

    kernel = functools.partial(_protonet_kernel, inv_n=1.0 / n_shot)

    flops_per_ep = (2 * K_LANE * S_PAD * D_PAD       # prototype sums (MXU)
                    + 2 * Q_PAD * D_PAD * K_LANE     # q . p (MXU)
                    + 2 * K_LANE * D_PAD             # ||p||^2 ones-row matmul
                    + 2 * Q_PAD * D_PAD              # ||q||^2
                    + 5 * Q_PAD * K_LANE)            # d2 / negate
    cost = pl.CostEstimate(
        flops=E_PAD * flops_per_ep,
        transcendentals=E_PAD * Q_PAD * K_LANE,      # sqrt
        bytes_accessed=E_PAD * (per_ep_in + per_ep_out) + avg_bytes)

    vmem_limit = int(min(vmem_cap * 0.9,
                         max(2 * (avg_bytes + EB * per_ep_bytes), 16 * 1024 * 1024)))

    out = pl.pallas_call(
        kernel,
        out_shape=jax.ShapeDtypeStruct((E_PAD, Q_PAD, K_LANE), dtype),
        grid=grid,
        in_specs=[
            pl.BlockSpec((K_LANE, S_PAD), lambda i: (0, 0)),        # resident, DMA'd once
            pl.BlockSpec((EB, S_PAD, D_PAD), lambda i: (i, 0, 0)),
            pl.BlockSpec((EB, Q_PAD, D_PAD), lambda i: (i, 0, 0)),
        ],
        out_specs=pl.BlockSpec((EB, Q_PAD, K_LANE), lambda i: (i, 0, 0)),
        compiler_params=pltpu.CompilerParams(
            dimension_semantics=("parallel",),
            vmem_limit_bytes=vmem_limit),
        cost_estimate=cost,
    )(sum_mat, sup, qry)

    out = out[:E, :n_query, :k_way]          # drop padded episodes / rows / classes
    return out[0] if single else out


def _reference_forward(feat, k_way, n_shot, query):
    """Pure-JAX reference mirroring the PyTorch forward (single episode, f32)."""
    n_support = k_way * n_shot
    support = feat[:n_support].astype(jnp.float32)
    queries = feat[n_support:].astype(jnp.float32)
    proto = support.reshape(k_way, n_shot, -1).mean(axis=1)
    diff = queries[:, None, :] - proto[None, :, :]
    return -jnp.sqrt(jnp.sum(diff * diff, axis=-1))


if __name__ == "__main__":
    # k_way=4 classes, n_shot=2 support, query=3 per class, D=32, E=5 episodes.
    k_way, n_shot, query, D, E = 4, 2, 3, 32, 5
    rows = k_way * n_shot + k_way * query            # 20

    key = jax.random.PRNGKey(0)
    feat = jax.random.normal(key, (E, rows, D), dtype=jnp.float32)

    # Batched episodes (EB-blocked grid).
    out = jax.block_until_ready(protonet_forward(feat, k_way, n_shot, query))
    assert out.shape == (E, k_way * query, k_way)
    ref = jax.vmap(lambda f: _reference_forward(f, k_way, n_shot, query))(feat)
    assert jnp.allclose(out, ref, rtol=1e-3, atol=1e-3), "batched f32 mismatch"

    # Single-episode 2-D path (exactly the PyTorch module signature).
    out1 = jax.block_until_ready(protonet_forward(feat[0], k_way, n_shot, query))
    assert out1.shape == (k_way * query, k_way)
    assert jnp.allclose(out1, ref[0], rtol=1e-3, atol=1e-3), "single-episode mismatch"

    # bf16 inputs: MXU operands stay bf16 (f32 accumulation), output is bf16.
    feat_bf16 = feat.astype(jnp.bfloat16)
    out_bf = jax.block_until_ready(protonet_forward(feat_bf16, k_way, n_shot, query))
    assert out_bf.shape == (E, k_way * query, k_way)
    assert out_bf.dtype == jnp.bfloat16
    ref_bf = jax.vmap(lambda f: _reference_forward(f, k_way, n_shot, query))(
        feat_bf16.astype(jnp.float32))
    assert bool(jnp.all(jnp.isfinite(out_bf.astype(jnp.float32))))
    assert jnp.allclose(out_bf.astype(jnp.float32), ref_bf, rtol=0.05, atol=0.25), \
        "bf16 mismatch"

    print("KERNEL_OK")
</pallas_src>

<mosaic_0001>
module attributes {stable_mosaic.version = 11 : i64} {
  func.func @_protonet_kernel(%arg0: i32, %arg1: memref<128x8xf32, #tpu.memory_space<vmem>>, %arg2: memref<3x8x128xf32, #tpu.memory_space<vmem>>, %arg3: memref<3x16x128xf32, #tpu.memory_space<vmem>>, %arg4: memref<3x16x128xf32, #tpu.memory_space<vmem>>) attributes {dimension_semantics = [#tpu.dimension_semantics<parallel>], iteration_bounds = array<i64: 2>, scalar_prefetch = 0 : i64, scratch_operands = 0 : i64, tpu.core_type = #tpu.core_type<tc>, window_params = [{pipeline_mode = #tpu.pipeline_mode<synchronous>, transform_indices = @transform_0, window_bounds = array<i64: 128, 8>}, {transform_indices = @transform_1, window_bounds = array<i64: 3, 8, 128>}, {transform_indices = @transform_2, window_bounds = array<i64: 3, 16, 128>}, {transform_indices = @transform_3, window_bounds = array<i64: 3, 16, 128>}]} {
    %c0 = arith.constant 0 : index
    %c0_0 = arith.constant 0 : index
    %c0_1 = arith.constant 0 : index
    %0 = vector.load %arg2[%c0, %c0_0, %c0_1] : memref<3x8x128xf32, #tpu.memory_space<vmem>>, vector<3x8x128xf32>
    %c0_2 = arith.constant 0 : index
    %c0_3 = arith.constant 0 : index
    %c0_4 = arith.constant 0 : index
    %1 = vector.load %arg3[%c0_2, %c0_3, %c0_4] : memref<3x16x128xf32, #tpu.memory_space<vmem>>, vector<3x16x128xf32>
    %c0_5 = arith.constant 0 : index
    %c0_6 = arith.constant 0 : index
    %2 = vector.load %arg1[%c0_5, %c0_6] : memref<128x8xf32, #tpu.memory_space<vmem>>, vector<128x8xf32>
    %3 = vector.shape_cast %2 : vector<128x8xf32> to vector<1x128x8xf32>
    %4 = vector.shape_cast %3 : vector<1x128x8xf32> to vector<1x128x8xf32>
    %5 = vector.broadcast %4 : vector<1x128x8xf32> to vector<3x128x8xf32>
    "tpu.trace_start"() <{level = 10 : i32, message = "ecs,esd->ecd"}> : () -> ()
    %cst = arith.constant dense<0.000000e+00> : vector<3x128x128xf32>
    %6 = tpu.matmul %5, %0, %cst {dimension_numbers = #tpu.dot_dimension_numbers<[2], [1], [1], [2], [0, 0, 0, 1, 1, 2], [0], [0]>} : vector<3x128x8xf32>, vector<3x8x128xf32>, vector<3x128x128xf32> -> vector<3x128x128xf32>
    "tpu.trace_stop"() : () -> ()
    %cst_7 = arith.constant 5.000000e-01 : f32
    %7 = vector.broadcast %cst_7 : f32 to vector<3x128x128xf32>
    %8 = arith.mulf %6, %7 : vector<3x128x128xf32>
    "tpu.trace_start"() <{level = 10 : i32, message = "eqd,ecd->eqc"}> : () -> ()
    %cst_8 = arith.constant dense<0.000000e+00> : vector<3x16x128xf32>
    %9 = tpu.matmul %1, %8, %cst_8 {dimension_numbers = #tpu.dot_dimension_numbers<[2], [2], [1], [1], [0, 0, 0, 1, 1, 1], [0], [0]>} : vector<3x16x128xf32>, vector<3x128x128xf32>, vector<3x16x128xf32> -> vector<3x16x128xf32>
    "tpu.trace_stop"() : () -> ()
    %10 = arith.mulf %1, %1 : vector<3x16x128xf32>
    %cst_9 = arith.constant dense<0.000000e+00> : vector<3x16xf32>
    %11 = vector.multi_reduction <add>, %10, %cst_9 [2] : vector<3x16x128xf32> to vector<3x16xf32>
    %12 = vector.shape_cast %11 : vector<3x16xf32> to vector<3x16x1xf32>
    %13 = arith.mulf %8, %8 : vector<3x128x128xf32>
    %cst_10 = arith.constant 1.000000e+00 : f32
    %14 = vector.broadcast %cst_10 : f32 to vector<3x1x128xf32>
    "tpu.trace_start"() <{level = 10 : i32, message = "eqd,ecd->eqc"}> : () -> ()
    %cst_11 = arith.constant dense<0.000000e+00> : vector<3x1x128xf32>
    %15 = tpu.matmul %14, %13, %cst_11 {dimension_numbers = #tpu.dot_dimension_numbers<[2], [2], [1], [1], [0, 0, 0, 1, 1, 1], [0], [0]>} : vector<3x1x128xf32>, vector<3x128x128xf32>, vector<3x1x128xf32> -> vector<3x1x128xf32>
    "tpu.trace_stop"() : () -> ()
    %16 = vector.broadcast %12 : vector<3x16x1xf32> to vector<3x16x128xf32>
    %17 = vector.broadcast %15 : vector<3x1x128xf32> to vector<3x16x128xf32>
    %18 = arith.addf %16, %17 : vector<3x16x128xf32>
    %cst_12 = arith.constant 2.000000e+00 : f32
    %19 = vector.broadcast %cst_12 : f32 to vector<3x16x128xf32>
    %20 = arith.mulf %19, %9 : vector<3x16x128xf32>
    %21 = arith.subf %18, %20 : vector<3x16x128xf32>
    %cst_13 = arith.constant 0.000000e+00 : f32
    %22 = vector.broadcast %cst_13 : f32 to vector<3x16x128xf32>
    %23 = arith.maximumf %21, %22 : vector<3x16x128xf32>
    %24 = math.sqrt %23 : vector<3x16x128xf32>
    %cst_14 = arith.constant 0.000000e+00 : f32
    %25 = vector.broadcast %cst_14 : f32 to vector<3x16x128xf32>
    %26 = arith.subf %25, %24 : vector<3x16x128xf32>
    %c0_15 = arith.constant 0 : index
    %c0_16 = arith.constant 0 : index
    %c0_17 = arith.constant 0 : index
    %27 = vector.load %arg4[%c0_15, %c0_16, %c0_17] : memref<3x16x128xf32, #tpu.memory_space<vmem>>, vector<3x16x128xf32>
    tpu.vector_store %arg4[%c0_15, %c0_16, %c0_17], %26 {strides = array<i32>} : memref<3x16x128xf32, #tpu.memory_space<vmem>>, vector<3x16x128xf32>,
    return
  }
  func.func @transform_0(%arg0: i32) -> (i32, i32) {
    %c0_i32 = arith.constant 0 : i32
    %c0_i32_0 = arith.constant 0 : i32
    %c0_i32_1 = arith.constant 0 : i32
    return %c0_i32, %c0_i32_0 : i32, i32
  }
  func.func @transform_1(%arg0: i32) -> (i32, i32, i32) {
    %c0_i32 = arith.constant 0 : i32
    %c0_i32_0 = arith.constant 0 : i32
    %c0_i32_1 = arith.constant 0 : i32
    return %arg0, %c0_i32, %c0_i32_0 : i32, i32, i32
  }
  func.func @transform_2(%arg0: i32) -> (i32, i32, i32) {
    %c0_i32 = arith.constant 0 : i32
    %c0_i32_0 = arith.constant 0 : i32
    %c0_i32_1 = arith.constant 0 : i32
    return %arg0, %c0_i32, %c0_i32_0 : i32, i32, i32
  }
  func.func @transform_3(%arg0: i32) -> (i32, i32, i32) {
    %c0_i32 = arith.constant 0 : i32
    %c0_i32_0 = arith.constant 0 : i32
    %c0_i32_1 = arith.constant 0 : i32
    return %arg0, %c0_i32, %c0_i32_0 : i32, i32, i32
  }
}

</mosaic_0001>

<bundles_post_ra>
// kernel: tpu_custom_call.1
= control target key start
LH: loop header
LB: loop body
LE: loop exit
PB: predicated region body
PF: predicated region fallthrough
CT: control target
= control target key end

     0   :  { %8 = vsyncpa [#allocation3], 0  ;;  %s2863_s0 = inlined_call_operand.vmem [shape: f32[128,8], index: 0, kind: input, shape index: {}]   ;;  %s2864_s1 = inlined_call_operand.hbm [shape: f32[6,8,128], index: 1, kind: input, shape index: {}]   ;;  %s2865_s2 = inlined_call_operand.vmem [shape: f32[6,16,128], index: 2, kind: input, shape index: {}]   ;;  %s2866_s3 = inlined_call_operand.hbm [shape: f32[6,16,128], index: 3, kind: output, shape index: {}]  }
   0x1   :  { %10 = vsyncpa [#allocation3 + $0x1], 0 }
   0x2   :  { %11 = vsyncpa [#allocation4], 0 }
   0x3   :  { %13 = vsyncpa [#allocation4 + $0x1], 0  ;;  %s2165_s12 = smov 0   ;;  %s2167_s13 = smov 0  }
   0x4   :  { %s2169_s14 = smov 0   ;;  %s2171_s15 = smov 0  }
   0x5 LB: > { %s2186_s16 = sadd.s32 4294967295, %s2134_s15   ;;  %s1464_s17 = sadd.s32 4294967294, %s2134_s15   ;;  %s2134_s15 = sphi %s2171_s15, %s2880_s15   ;;  %s2130_s14 = sphi %s2169_s14, %s2879_s14   ;;  %s2126_s13 = sphi %s2167_s13, %s2878_s13   ;;  %s2122_s12 = sphi %s2165_s12, %s2877_s12  }
   0x6   : > { %s2190_s18 = sadd.s32 1, %s2134_s15   ;;  %s47_s19 = sadd.s32 1, %s2130_s14 }
   0x7   : > { %s44_s20 = ssub.s32 %s2134_s15, %s2190_s18  ;;  %p54_p0 = scmp.ne.s32.totalorder %s2130_s14, %s2126_s13 }
   0x8   : > { %p45_p1 = scmp.eq.s32.totalorder %s44_s20, 0  ;;  %p55_p2 = scmp.eq.s32.totalorder %s2134_s15, 0 }
   0x9   : > { %p60_p3 = scmp.ne.s32.totalorder %s2126_s13, %s2122_s12  ;;  %p61_p4 = scmp.eq.s32.totalorder %s2186_s16, 0 }
   0xa   : > { %s2202_s21 = scalar_select %p45_p1, %s2130_s14, %s47_s19  }
   0xb   : > { %p56_p5 = por %p55_p2, %p54_p0  ;;  %p2204_p6 = por %p61_p4, %p60_p3 }
   0xc   : > { %p110_p7 = scmp.eq.s32.totalorder %s2186_s16, 1  ;;  %p116_p8 = scmp.eq.s32.totalorder %s1464_s17, 1 }
   0xd   : > { %s2869_s22 = scalar_select %p2204_p6, 1, 0 }
   0xe   : > { %p1989_p10 = scmp.lt.s32.totalorder %s2134_s15, 2  ;;  %p2211_p11 = por %p110_p7, %p54_p0 }
   0xf   : > { %p2215_p12 = por %p116_p8, %p60_p3  ;;  %s139_s25 = sand.u32 1, %s2130_s14  }
  0x10   : > { %s2870_s23 = scalar_select %p2211_p11, 1, 0 }
  0x11   : > { %s2871_s24 = scalar_select %p2215_p12, 1, 0 }
  0x12   : > { %s1523_s26 = smul.u32 384, %s2134_s15  ;;  %p2226_p13 = pnand %p1989_p10, %p56_p5 }
  0x13   : > { %s1974_s27 = smul.u32 24, %s139_s25  ;;  %s2232_s7 = scalar_lea.sflag [#allocation3], %s139_s25 }
  0x14   : > { %s2224_s30 = scalar_lea.hbm %s2864_s1, %s1523_s26  ;;  %p2044_p1 = pneg %p2226_p13 }
  0x15   : > { %s143_s5 = scalar_lea.vmem [#allocation2], %s1974_s27  ;;  %s2042_s8 = scalar_lea.hbm %s2224_s30, 384 }
  0x16   : > { %s150_s6 = sshll.u32 %s143_s5, 4  ;;  %p2043_p0 = scmp.ne.s32.totalorder %s2224_s30, %s2042_s8  ;;  %s2230_s6 = int_to_ptr.vmem [resolvable:$true] %s150_s6 }
  0x17   : > { %s2047_s11 = scalar_lea.hbm %s2864_s1, 768  ;;  %p2048_p4 = scmp.lt.s32.totalorder %s2224_s30, %s2864_s1 }
  0x18   : > { %p2045_p2 = pnand %p2044_p1, %p2043_p0  ;;  %p2049_p5 = scmp.lt.s32.totalorder %s2047_s11, %s2042_s8 }
  0x1a   : > { %p2046_p3 = pneg %p2045_p2  ;;  %p2050_p7 = por %p2049_p5, %p2048_p4 }
  0x1c   : > { %p2051_p8 = pnand %p2050_p7, %p2046_p3 }
  0x1e   : > { %2054 = shalt.err (!%p2051_p8)
}
  0x1f   : > { %s2055_s20 = scalar_lea.vmem %s2230_s6, 384  ;;  %s2136_s25 = smov [#allocation2]  }
  0x20   : > { %p2056_p10 = scmp.ne.s32.totalorder %s2230_s6, %s2055_s20  ;;  %s2060_s26 = sshll.u32 %s2136_s25, 4  ;;  %s2061_s26 = int_to_ptr.vmem [resolvable:$false] %s2060_s26 }
  0x21   : > { %s2062_s27 = scalar_lea.vmem %s2061_s26, 768  ;;  %p2063_p2 = scmp.lt.s32.totalorder %s2230_s6, %s2061_s26 }
  0x22   : > { %p2058_p9 = pnand %p2056_p10, %p2044_p1  ;;  %p2064_p12 = scmp.lt.s32.totalorder %s2062_s27, %s2055_s20 }
  0x24   : > { %p2059_p0 = pneg %p2058_p9  ;;  %p2065_p11 = por %p2064_p12, %p2063_p2 }
  0x26   : > { %p2066_p6 = pnand %p2065_p11, %p2059_p0 }
  0x28   : > { %2069 = shalt.err (!%p2066_p6)
}
  0x29   : > { %s2137_s28 = smov 128   ;;  %s2138_s29 = smov 8  }
  0x2a   : > { %1984 = dma.hbm_to_vmem [thread:$0]  (!%p2226_p13), %s2224_s30, 384, %s2230_s6, %s2232_s7, %s2137_s28, %s2137_s28, %s2138_s29  }
  0x2b   : > { %p1468_p9 = scmp.ge.s32.totalorder %s2134_s15, 1  ;;  %p168_p1 = scmp.lt.s32.totalorder %s2134_s15, 3 }
  0x2d   : > { %p169_p3 = pnand %p1468_p9, %p168_p1 }
  0x2e   : > { %s2256_s5 = sand.u32 (!%p169_p3), 1, %s2126_s13   ;;  %p2873_p6 = scmp.ne.s32.totalorder (!%p169_p3), %s2869_s22, 0 }
  0x2f   : > { %172 = sbr.rel (%p169_p3) target bundleno = 723 (0x2d3), region = 32  ;;  %s175_s9 = scalar_lea.sflag (!%p169_p3), [#allocation3], %s2256_s5 }
  0x30   : > { %s1975_s8 = smul.u32 (!%p169_p3), 24, %s2256_s5 }
  0x32   : > { %s178_s10 = scalar_lea.vmem (!%p169_p3), [#allocation2], %s1975_s8 }
  0x34   : > { %2113 = dma.done.wait (%p2873_p6), %s175_s9, 384  }
  0x35   : > { %2115 = vsyncadd (%p2873_p6), %s175_s9, 4294966912  ;;  %vm241_vm0 = vcmask 64512   ;;  %v216_v0 = vld [vmem:[%s178_s10] sm:$0xff]  ;;  %v234_v2 = vld [vmem:[%s2863_s0 + $0x48] sm:$0xff]  ;;  %s208_s9 = smul.u32 3, %s2186_s16  ;;  %vm2140_vm1 = vmmov 0  }
  0x36   : > { %v233_v1 = vld [vmem:[%s2863_s0 + $0x40] sm:$0xff]  ;;  %1972 = vmatprep.subr.mxu1 %v216_v0  ;;  %v235_v4 = vld [vmem:[%s2863_s0 + $0x50] sm:$0xff]  ;;  %1684 = vmatprep.subr.mxu0 %v216_v0  ;;  %v236_v5 = vld [vmem:[%s2863_s0 + $0x58] sm:$0xff]  ;;  %s1976_s11 = smul.u32 48, %s2256_s5  ;;  %s1365_s25 = scalar_lea.sflag [#allocation4], %s2256_s5 }
  0x37   : > { %1698 = vmatprep.mubr.msk.f32.mxu1 %vm241_vm0, %v233_v1  ;;  %v217_v3 = vld [vmem:[%s178_s10 + $0x8] sm:$0xff]  ;;  %1973 = vmatpush3.msra.mxu1 %v216_v0  ;;  %v227_v9 = vld [vmem:[%s2863_s0 + $0x10] sm:$0xff]  ;;  %v228_v13 = vld [vmem:[%s2863_s0 + $0x18] sm:$0xff]  ;;  %p209_p11 = scmp.lt.s32.totalorder %s208_s9, 5  ;;  %p2874_p13 = scmp.ne.s32.totalorder %s2870_s23, 0 }
  0x38   : > { %1699 = vmatmul.mubr.msk.f32.vlgmr.msra.gmra.mxu1 %vm241_vm0, %v234_v2  ;;  %1710 = vmatprep.subr.mxu1 %v217_v3  ;;  %v225_v6 = vld [vmem:[%s2863_s0] sm:$0xff]  ;;  %v226_v8 = vld [vmem:[%s2863_s0 + $0x8] sm:$0xff]  ;;  %v239_v12 = vld [vmem:[%s2863_s0 + $0x70] sm:$0xff]  ;;  %s2803_s17 = scalar_lea.vmem [#allocation5], %s1976_s11  ;;  %s2142_s27 = smov [#allocation5]  }
  0x39   : > { %1711 = vmatpush3.msra.mxu1 %v217_v3  ;;  %1701 = vmatprep.mubr.msk.f32.mxu1 %vm241_vm0, %v235_v4  ;;  %v237_v7 = vld [vmem:[%s2863_s0 + $0x60] sm:$0xff]  ;;  %v218_v10 = vld [vmem:[%s178_s10 + $0x10] sm:$0xff]  ;;  %v240_v15 = vld [vmem:[%s2863_s0 + $0x78] sm:$0xff]  ;;  %s2882_s9 = smov (!%p209_p11, %s208_s9), 5  ;;  %s1527_s10 = smul.u32 768, %s2186_s16 }
  0x3a   : > { %1685 = vmatpush3.msra.mxu0 %v216_v0  ;;  %1686 = vmatprep.mubr.msk.f32.mxu0 %vm241_vm0, %v225_v6  ;;  %v238_v11 = vld [vmem:[%s2863_s0 + $0x68] sm:$0xff]  ;;  %v229_v14 = vld [vmem:[%s2863_s0 + $0x20] sm:$0xff]  ;;  %v231_v17 = vld [vmem:[%s2863_s0 + $0x30] sm:$0xff]  ;;  %s1524_s30 = sshll.u32 %s2882_s9, 4  ;;  %s1379_s22 = sshll.u32 %s2803_s17, 4  ;;  %s2818_s22 = int_to_ptr.vmem [resolvable:$true] %s1379_s22 }
  0x3b   : > { %1687 = vmatmul.mubr.msk.f32.vlgmr.msra.gmra.mxu0 %vm241_vm0, %v226_v8  ;;  %1736 = vmatprep.subr.mxu0 %v218_v10  ;;  %v230_v16 = vld [vmem:[%s2863_s0 + $0x28] sm:$0xff]  ;;  %v232_v18 = vld [vmem:[%s2863_s0 + $0x38] sm:$0xff]  ;;  %s2364_s7 = scalar_lea.vmem %s2865_s2, %s1524_s30  ;;  %s2816_s16 = scalar_lea.hbm %s2866_s3, %s1527_s10 }
  0x3c   : > { %1702 = vmatmul.mubr.msk.f32.gmra.mxu1 %vm241_vm0, %v236_v5  ;;  %1689 = vmatprep.mubr.msk.f32.mxu0 %vm241_vm0, %v227_v9  ;;  %v2367_v19 = vld [vmem:[%s2364_s7] sm:$0xff]  ;;  %v2371_v20 = vld [vmem:[%s2364_s7 + $0x10] sm:$0xff]  ;;  %s2070_s26 = scalar_lea.vmem %s2818_s22, 768  ;;  %s2074_s28 = sshll.u32 %s2142_s27, 4  ;;  %s2075_s28 = int_to_ptr.vmem [resolvable:$false] %s2074_s28 }
  0x3d   : > { %1704 = vmatprep.mubr.msk.f32.mxu1 %vm241_vm0, %v237_v7  ;;  %1737 = vmatpush3.msra.mxu0 %v218_v10  ;;  %p2071_p12 = scmp.ne.s32.totalorder %s2818_s22, %s2070_s26  ;;  %s2076_s29 = scalar_lea.vmem %s2075_s28, 1536 }
  0x3e   : > { %p2077_p7 = scmp.lt.s32.totalorder %s2818_s22, %s2075_s28  ;;  %p2078_p8 = scmp.lt.s32.totalorder %s2076_s29, %s2070_s26 }
  0x3f   : > { %1690 = vmatmul.mubr.msk.f32.gmra.mxu0 %vm241_vm0, %v228_v13  ;;  %p2072_p4 = pnand %p2071_p12, %p2874_p13 }
  0x40   : > { %1705 = vmatmul.mubr.msk.f32.gmra.mxu1 %vm241_vm0, %v238_v11  ;;  %1692 = vmatprep.mubr.msk.f32.mxu0 %vm241_vm0, %v229_v14  ;;  %p2079_p10 = por %p2078_p8, %p2077_p7 }
  0x41   : > { %1707 = vmatprep.mubr.msk.f32.mxu1 %vm241_vm0, %v239_v12  ;;  %p2073_p5 = pneg %p2072_p4 }
  0x43   : > { %1693 = vmatmul.mubr.msk.f32.gmra.mxu0 %vm241_vm0, %v230_v16  ;;  %p2080_p0 = pnand %p2079_p10, %p2073_p5 }
  0x44   : > { %1708 = vmatmul.mubr.msk.f32.gmra.mxu1 %vm241_vm0, %v240_v15  ;;  %1695 = vmatprep.mubr.msk.f32.mxu0 %vm241_vm0, %v231_v17 }
  0x45   : > { %1712 = vmatprep.mubr.msk.f32.mxu1 %vm241_vm0, %v225_v6 }
  0x47   : > { %1696 = vmatmul.mubr.msk.f32.gmra.mxu0 %vm241_vm0, %v232_v18 }
  0x48   : > { %1713 = vmatmul.mubr.msk.f32.vlgmr.msra.gmra.mxu1 %vm241_vm0, %v226_v8  ;;  %1738 = vmatprep.mubr.msk.f32.mxu0 %vm241_vm0, %v225_v6 }
  0x49   : > { %1715 = vmatprep.mubr.msk.f32.mxu1 %vm241_vm0, %v227_v9 }
  0x4b   : > { %1739 = vmatmul.mubr.msk.f32.vlgmr.msra.gmra.mxu0 %vm241_vm0, %v226_v8 }
  0x4c   : > { %1716 = vmatmul.mubr.msk.f32.gmra.mxu1 %vm241_vm0, %v228_v13  ;;  %1741 = vmatprep.mubr.msk.f32.mxu0 %vm241_vm0, %v227_v9 }
  0x4d   : > { %1718 = vmatprep.mubr.msk.f32.mxu1 %vm241_vm0, %v229_v14 }
  0x4f   : > { %1742 = vmatmul.mubr.msk.f32.gmra.mxu0 %vm241_vm0, %v228_v13 }
  0x50   : > { %1719 = vmatmul.mubr.msk.f32.gmra.mxu1 %vm241_vm0, %v230_v16  ;;  %1744 = vmatprep.mubr.msk.f32.mxu0 %vm241_vm0, %v229_v14 }
  0x51   : > { %1721 = vmatprep.mubr.msk.f32.mxu1 %vm241_vm0, %v231_v17 }
  0x53   : > { %1745 = vmatmul.mubr.msk.f32.gmra.mxu0 %vm241_vm0, %v230_v16 }
  0x54   : > { %1722 = vmatmul.mubr.msk.f32.gmra.mxu1 %vm241_vm0, %v232_v18  ;;  %1747 = vmatprep.mubr.msk.f32.mxu0 %vm241_vm0, %v231_v17 }
  0x55   : > { %1724 = vmatprep.mubr.msk.f32.mxu1 %vm241_vm0, %v233_v1 }
  0x57   : > { %1748 = vmatmul.mubr.msk.f32.gmra.mxu0 %vm241_vm0, %v232_v18 }
  0x58   : > { %1725 = vmatmul.mubr.msk.f32.gmra.mxu1 %vm241_vm0, %v234_v2  ;;  %1750 = vmatprep.mubr.msk.f32.mxu0 %vm241_vm0, %v233_v1 }
  0x59   : > { %1727 = vmatprep.mubr.msk.f32.mxu1 %vm241_vm0, %v235_v4 }
  0x5b   : > { %1751 = vmatmul.mubr.msk.f32.gmra.mxu0 %vm241_vm0, %v234_v2 }
  0x5c   : > { %1728 = vmatmul.mubr.msk.f32.gmra.mxu1 %vm241_vm0, %v236_v5  ;;  %1753 = vmatprep.mubr.msk.f32.mxu0 %vm241_vm0, %v235_v4 }
  0x5d   : > { %1730 = vmatprep.mubr.msk.f32.mxu1 %vm241_vm0, %v237_v7 }
  0x5f   : > { %1754 = vmatmul.mubr.msk.f32.gmra.mxu0 %vm241_vm0, %v236_v5 }
  0x60   : > { %1731 = vmatmul.mubr.msk.f32.gmra.mxu1 %vm241_vm0, %v238_v11  ;;  %1756 = vmatprep.mubr.msk.f32.mxu0 %vm241_vm0, %v237_v7 }
  0x61   : > { %1733 = vmatprep.mubr.msk.f32.mxu1 %vm241_vm0, %v239_v12 }
  0x63   : > { %1757 = vmatmul.mubr.msk.f32.gmra.mxu0 %vm241_vm0, %v238_v11 }
  0x64   : > { %1734 = vmatmul.mubr.msk.f32.gmra.mxu1 %vm241_vm0, %v240_v15  ;;  %1759 = vmatprep.mubr.msk.f32.mxu0 %vm241_vm0, %v239_v12 }
  0x65   : > { %1794 = vmatprep.mubr.f32.mxu1 %v2367_v19 }
  0x67   : > { %1760 = vmatmul.mubr.msk.f32.gmra.mxu0 %vm241_vm0, %v240_v15 }
  0x68   : > { %1829 = vmatprep.mubr.f32.mxu0 %v2371_v20 }
  0xf8   : > { %v1700_v21 = vpop.f32.mrf.mxu1 }
  0xf9   : > { %v2437_v59 = vmul.f32 0.5, %v1700_v21 }
  0xfa   : > { %v396_v22 = vpop.f32.mrf.mxu1 }
  0xfb   : > { %v2374_v23 = vpop.f32.mrf.mxu0  ;;  %v2443_v63 = vmul.f32 0.5, %v396_v22 }
  0xfc   : > { %v1703_v24 = vpop.f32.mrf.mxu1 }
  0xfd   : > { %v2376_v25 = vpop.f32.mrf.mxu0  ;;  %v2419_v51 = vmul.f32 0.5, %v1703_v24 }
  0xfe   : > { %v406_v26 = vpop.f32.mrf.mxu1 }
  0xff   : > { %v2378_v27 = vpop.f32.mrf.mxu0  ;;  %v2429_v55 = vmul.f32 0.5, %v406_v26 }
 0x100   : > { %v1706_v28 = vpop.f32.mrf.mxu1  ;;  %v2484_v16 = vmul.f32 0.5, %v2378_v27  ;;  %v2504_v27 = vmul.f32 0.5, %v2374_v23 }
 0x101   : > { %v2380_v29 = vpop.f32.mrf.mxu0  ;;  %v2395_v41 = vmul.f32 0.5, %v1706_v28 }
 0x102   : > { %v416_v30 = vpop.f32.mrf.mxu1  ;;  %v2493_v21 = vmul.f32 0.5, %v2380_v29 }
 0x103   : > { %v1694_v31 = vpop.f32.mrf.mxu0  ;;  %v2407_v46 = vmul.f32 0.5, %v416_v30  ;;  %v2513_v30 = vmul.f32 0.5, %v2376_v25  ;;  %v220_v25 = vld [vmem:[%s2364_s7 + $0x8] sm:$0xff] }
 0x104   : > { %v1709_v32 = vpop.f32.mrf.mxu1  ;;  %v2464_v10 = vmul.f32 0.5, %v1694_v31 }
 0x105   : > { %v2382_v33 = vmul.f32 0.5, %v1709_v32  ;;  %v2384_v34 = vpop.f32.mrf.mxu0 }
 0x106   : > { %v426_v35 = vpop.f32.mrf.mxu1  ;;  %v2475_v13 = vmul.f32 0.5, %v2384_v34 }
 0x107   : > { %v2386_v36 = vmul.f32 0.5, %v426_v35  ;;  %1762 = vmatprep.subr.mxu1 %v2382_v33  ;;  %v1697_v37 = vpop.f32.mrf.mxu0 }
 0x108   : > { %v2389_v38 = vpop.f32.mrf.mxu1  ;;  %1763 = vmatpush3.xpose.msra.mxu1 %v2382_v33  ;;  %v2447_v1 = vmul.f32 0.5, %v1697_v37 }
 0x109   : > { %1764 = vmatprep.subr.mxu1 %v2386_v36  ;;  %v386_v39 = vpop.f32.mrf.mxu0 }
 0x10a   : > { %v2393_v40 = vpop.f32.mrf.mxu1  ;;  %v2454_v6 = vmul.f32 0.5, %v386_v39  ;;  %v223_v39 = vld [vmem:[%s2364_s7 + $0x20] sm:$0xff] }
 0x10b   : > { %v2397_v42 = vpop.f32.mrf.mxu0 }
 0x10c   : > { %v2399_v43 = vpop.f32.mrf.mxu1  ;;  %1765 = vmatpush3.xpose.msra.mxu1 %v2386_v36 }
 0x10d   : > { %1766 = vmatprep.subr.mxu1 %v2395_v41  ;;  %v2403_v44 = vpop.f32.mrf.mxu0 }
 0x10e   : > { %v2405_v45 = vpop.f32.mrf.mxu1 }
 0x10f   : > { %v2409_v47 = vpop.f32.mrf.mxu0 }
 0x110   : > { %v2411_v48 = vpop.f32.mrf.mxu1  ;;  %1767 = vmatpush3.xpose.msra.mxu1 %v2395_v41 }
 0x111   : > { %1768 = vmatprep.subr.mxu1 %v2407_v46  ;;  %v2417_v50 = vpop.f32.mrf.mxu0 }
 0x112   : > { %v2415_v49 = vpop.f32.mrf.mxu1 }
 0x113   : > { %v2427_v54 = vpop.f32.mrf.mxu0 }
 0x114   : > { %v2421_v52 = vpop.f32.mrf.mxu1  ;;  %1769 = vmatpush3.xpose.msra.mxu1 %v2407_v46 }
 0x115   : > { %1770 = vmatprep.subr.mxu1 %v2419_v51  ;;  %v2435_v58 = vpop.f32.mrf.mxu0  ;;  %v2525_v34 = vmul.f32 0.5, %v2421_v52 }
 0x116   : > { %v2425_v53 = vpop.f32.mrf.mxu1 }
 0x117   : > { %v2441_v62 = vpop.f32.mrf.mxu0  ;;  %v2535_v37 = vmul.f32 0.5, %v2425_v53 }
 0x118   : > { %v1726_v56 = vpop.f32.mrf.mxu1  ;;  %1771 = vmatpush3.xpose.msra.mxu1 %v2419_v51 }
 0x119   : > { %1772 = vmatprep.subr.mxu1 %v2429_v55  ;;  %v2449_v3 = vpop.f32.mrf.mxu0  ;;  %v2506_v28 = vmul.f32 0.5, %v1726_v56  ;;  %v2545_v56 = vmul.f32 0.5, %v2411_v48  ;;  %v2563_v48 = vmul.f32 0.5, %v2399_v43  ;;  %v998_v43 = vmul.f32 %v2367_v19, %v2367_v19 }
 0x11a   : > { %v2433_v57 = vpop.f32.mrf.mxu1 }
 0x11b   : > { %v2457_v8 = vpop.f32.mrf.mxu0  ;;  %v2516_v31 = vmul.f32 0.5, %v2433_v57  ;;  %v2554_v57 = vmul.f32 0.5, %v2415_v49  ;;  %v2572_v49 = vmul.f32 0.5, %v2405_v45  ;;  %1004 = vadd.xlane.f32.xlu0 %v998_v43  ;;  %v999_v45 = vmul.f32 %v220_v25, %v220_v25 }
 0x11c   : > { %v1729_v60 = vpop.f32.mrf.mxu1  ;;  %1773 = vmatpush3.xpose.msra.mxu1 %v2429_v55 }
 0x11d   : > { %1774 = vmatprep.subr.mxu1 %v2437_v59  ;;  %v2468_v11 = vpop.f32.mrf.mxu0  ;;  %v2488_v18 = vmul.f32 0.5, %v1729_v60 }
 0x11e   : > { %v551_v61 = vpop.f32.mrf.mxu1  ;;  %v2594_v19 = vmul.f32 0.5, %v2468_v11  ;;  %v2611_v11 = vmul.f32 0.5, %v2449_v3  ;;  %v224_v3 = vld [vmem:[%s2364_s7 + $0x28] sm:$0xff] }
 0x11f   : > { %v1755_v14 = vpop.f32.mrf.mxu0  ;;  %v2497_v24 = vmul.f32 0.5, %v551_v61  ;;  %1006 = vadd.xlane.f32.xlu0 %v999_v45 }
 0x120   : > { %v1732_v0 = vpop.f32.mrf.mxu1  ;;  %1775 = vmatpush3.xpose.msra.mxu1 %v2437_v59  ;;  %v2558_v60 = vmul.f32 0.5, %v1755_v14  ;;  %v1002_v14 = vmul.f32 %v223_v39, %v223_v39 }
 0x121   : > { %1776 = vmatprep.subr.mxu1 %v2443_v63  ;;  %v2470_v12 = vmul.f32 0.5, %v1732_v0  ;;  %v696_v17 = vpop.f32.mrf.mxu0  ;;  %v2581_v0 = vmul.f32 0.5, %v2389_v38  ;;  %v2601_v38 = vmul.f32 0.5, %v2441_v62  ;;  %v1000_v62 = vmul.f32 %v2371_v20, %v2371_v20 }
 0x122   : > { %v561_v2 = vpop.f32.mrf.mxu1  ;;  %v2567_v61 = vmul.f32 0.5, %v696_v17  ;;  %v1030_v17 = vmul.f32 %v2386_v36, %v2386_v36  ;;  %v2623_v20 = vmul.f32 0.5, %v2427_v54  ;;  %v1029_v36 = vmul.f32 %v2395_v41, %v2395_v41 }
 0x123   : > { %v2479_v15 = vmul.f32 0.5, %v561_v2  ;;  %v1758_v22 = vpop.f32.mrf.mxu0  ;;  %v2584_v2 = vmul.f32 0.5, %v2457_v8  ;;  %v1031_v8 = vmul.f32 %v2382_v33, %v2382_v33  ;;  %1008 = vadd.xlane.f32.xlu1 %v1000_v62  ;;  %1012 = vadd.xlane.f32.xlu0 %v1002_v14  ;;  %v1028_v54 = vmul.f32 %v2407_v46, %v2407_v46 }
 0x124   : > { %v1735_v4 = vpop.f32.mrf.mxu1  ;;  %1777 = vmatpush3.xpose.msra.mxu1 %v2443_v63  ;;  %v2540_v52 = vmul.f32 0.5, %v1758_v22  ;;  %v1003_v22 = vmul.f32 %v224_v3, %v224_v3  ;;  %v1027_v41 = vmul.f32 %v2419_v51, %v2419_v51  ;;  %v1026_v46 = vmul.f32 %v2429_v55, %v2429_v55 }
 0x125   : > { %v2452_v5 = vmul.f32 0.5, %v1735_v4  ;;  %1778 = vmatprep.subr.mxu1 %v2447_v1  ;;  %v706_v26 = vpop.f32.mrf.mxu0  ;;  %v2591_v4 = vmul.f32 0.5, %v2393_v40  ;;  %v222_v40 = vld [vmem:[%s2364_s7 + $0x18] sm:$0xff]  ;;  %v2664_v51 = vmul.f32 0.5, %v2403_v44  ;;  %v1023_v44 = vmul.f32 %v2447_v1, %v2447_v1 }
 0x126   : > { %v571_v7 = vpop.f32.mrf.mxu1  ;;  %v2549_v53 = vmul.f32 0.5, %v706_v26  ;;  %v1001_v33 = vmul.f32 %v222_v40, %v222_v40  ;;  %v2632_v26 = vmul.f32 0.5, %v2435_v58  ;;  %v2648_v58 = vmul.f32 0.5, %v2417_v50 }
 0x127   : > { %v2459_v9 = vmul.f32 0.5, %v571_v7  ;;  %1797 = vmatprep.subr.mxu0 %v2452_v5  ;;  %v1761_v29 = vpop.f32.mrf.mxu0  ;;  %v2139_v7 = vmov 0.0   ;;  %v1025_v50 = vmul.f32 %v2437_v59, %v2437_v59  ;;  %v1047_v55 = vmul.f32 %v2452_v5, %v2452_v5 }
 0x128   : > { %1779 = vmatpush3.xpose.msra.mxu1 %v2447_v1  ;;  %1798 = vmatpush3.xpose.msra.mxu0 %v2452_v5  ;;  %v2522_v23 = vmul.f32 0.5, %v1761_v29  ;;  %v2640_v29 = vmul.f32 0.5, %v2409_v47  ;;  %v2656_v47 = vmul.f32 0.5, %v2397_v42  ;;  %v1024_v42 = vmul.f32 %v2443_v63, %v2443_v63 }
 0x129   : > { %1799 = vmatprep.subr.mxu0 %v2459_v9  ;;  %1780 = vmatprep.subr.mxu1 %v2454_v6  ;;  %v716_v32 = vpop.f32.mrf.mxu0  ;;  %v1022_v59 = vmul.f32 %v2454_v6, %v2454_v6  ;;  %v1046_v63 = vmul.f32 %v2459_v9, %v2459_v9  ;;  %v1021_v1 = vmul.f32 %v2464_v10, %v2464_v10 }
 0x12a   : > { %v2532_v35 = vmul.f32 0.5, %v716_v32  ;;  %1010 = vadd.xlane.f32.xlu1 %v1001_v33  ;;  %v1045_v5 = vmul.f32 %v2470_v12, %v2470_v12  ;;  %v2141_v32 = vmov 1.0   ;;  %v1053_v43 = vmul.f32 %v2623_v20, %v2623_v20 }
 0x12b   : > { %v1050_v45 = vmul.f32 %v2648_v58, %v2648_v58 }
 0x12c   : > { %1781 = vmatpush3.xpose.msra.mxu1 %v2454_v6  ;;  %1800 = vmatpush3.xpose.msra.mxu0 %v2459_v9  ;;  %v1020_v6 = vmul.f32 %v2475_v13, %v2475_v13  ;;  %v1044_v9 = vmul.f32 %v2479_v15, %v2479_v15 }
 0x12d   : > { %1801 = vmatprep.subr.mxu0 %v2470_v12  ;;  %1782 = vmatprep.subr.mxu1 %v2464_v10 }
 0x12e   : > { %1014 = vadd.xlane.f32.xlu1 %v1003_v22 }
 0x130   : > { %1783 = vmatpush3.xpose.msra.mxu1 %v2464_v10  ;;  %1802 = vmatpush3.xpose.msra.mxu0 %v2470_v12  ;;  %v1019_v10 = vmul.f32 %v2484_v16, %v2484_v16  ;;  %v1043_v12 = vmul.f32 %v2488_v18, %v2488_v18 }
 0x131   : > { %1803 = vmatprep.subr.mxu0 %v2479_v15  ;;  %1784 = vmatprep.subr.mxu1 %v2475_v13 }
 0x134   : > { %1785 = vmatpush3.xpose.msra.mxu1 %v2475_v13  ;;  %1804 = vmatpush3.xpose.msra.mxu0 %v2479_v15  ;;  %v1018_v13 = vmul.f32 %v2493_v21, %v2493_v21  ;;  %v1042_v15 = vmul.f32 %v2497_v24, %v2497_v24 }
 0x135   : > { %1805 = vmatprep.subr.mxu0 %v2488_v18  ;;  %1786 = vmatprep.subr.mxu1 %v2484_v16 }
 0x138   : > { %1787 = vmatpush3.xpose.msra.mxu1 %v2484_v16  ;;  %1806 = vmatpush3.xpose.msra.mxu0 %v2488_v18  ;;  %v1017_v16 = vmul.f32 %v2504_v27, %v2504_v27  ;;  %v1041_v18 = vmul.f32 %v2506_v28, %v2506_v28 }
 0x139   : > { %1807 = vmatprep.subr.mxu0 %v2497_v24  ;;  %1788 = vmatprep.subr.mxu1 %v2493_v21 }
 0x13c   : > { %1789 = vmatpush3.xpose.msra.mxu1 %v2493_v21  ;;  %1808 = vmatpush3.xpose.msra.mxu0 %v2497_v24  ;;  %v1016_v21 = vmul.f32 %v2513_v30, %v2513_v30  ;;  %v1040_v24 = vmul.f32 %v2516_v31, %v2516_v31 }
 0x13d   : > { %1790 = vmatprep.subr.mxu1 %v2504_v27  ;;  %1809 = vmatprep.subr.mxu0 %v2506_v28 }
 0x140   : > { %1791 = vmatpush3.xpose.msra.mxu1 %v2504_v27  ;;  %1810 = vmatpush3.xpose.msra.mxu0 %v2506_v28  ;;  %v1039_v27 = vmul.f32 %v2525_v34, %v2525_v34  ;;  %v1063_v28 = vmul.f32 %v2522_v23, %v2522_v23 }
 0x141   : > { %1792 = vmatprep.subr.mxu1 %v2513_v30  ;;  %1811 = vmatprep.subr.mxu0 %v2516_v31 }
 0x144   : > { %1793 = vmatpush3.xpose.msra.mxu1 %v2513_v30  ;;  %1812 = vmatpush3.xpose.msra.mxu0 %v2516_v31  ;;  %v1038_v30 = vmul.f32 %v2535_v37, %v2535_v37  ;;  %v1062_v31 = vmul.f32 %v2532_v35, %v2532_v35 }
 0x145   : > { %1813 = vmatprep.subr.mxu0 %v2525_v34  ;;  %1832 = vmatprep.subr.mxu1 %v2522_v23 }
 0x147   : > { %1795 = vmatmul.mubr.f32.vlgmr.msra.gmra.mxu1 %v220_v25  ;;  %v1036_v25 = vmul.f32 %v2554_v57, %v2554_v57 }
 0x148   : > { %1814 = vmatpush3.xpose.msra.mxu0 %v2525_v34  ;;  %1833 = vmatpush3.xpose.msra.mxu1 %v2522_v23  ;;  %v1037_v23 = vmul.f32 %v2545_v56, %v2545_v56  ;;  %v1061_v34 = vmul.f32 %v2540_v52, %v2540_v52 }
 0x149   : > { %1815 = vmatprep.subr.mxu0 %v2535_v37  ;;  %1834 = vmatprep.subr.mxu1 %v2532_v35 }
 0x14a   : > { %1864 = vmatprep.mubr.f32.mxu1 %v223_v39  ;;  %v1059_v39 = vmul.f32 %v2558_v60, %v2558_v60 }
 0x14c   : > { %1816 = vmatpush3.xpose.msra.mxu0 %v2535_v37  ;;  %1835 = vmatpush3.xpose.msra.mxu1 %v2532_v35  ;;  %v1060_v35 = vmul.f32 %v2549_v53, %v2549_v53  ;;  %v1035_v37 = vmul.f32 %v2563_v48, %v2563_v48 }
 0x14d   : > { %1817 = vmatprep.subr.mxu0 %v2545_v56  ;;  %1836 = vmatprep.subr.mxu1 %v2540_v52 }
 0x150   : > { %1818 = vmatpush3.xpose.msra.mxu0 %v2545_v56  ;;  %1837 = vmatpush3.xpose.msra.mxu1 %v2540_v52  ;;  %v1034_v52 = vmul.f32 %v2572_v49, %v2572_v49  ;;  %v1058_v56 = vmul.f32 %v2567_v61, %v2567_v61 }
 0x151   : > { %1819 = vmatprep.subr.mxu0 %v2554_v57  ;;  %1838 = vmatprep.subr.mxu1 %v2549_v53 }
 0x154   : > { %1820 = vmatpush3.xpose.msra.mxu0 %v2554_v57  ;;  %1839 = vmatpush3.xpose.msra.mxu1 %v2549_v53  ;;  %v1033_v53 = vmul.f32 %v2581_v0, %v2581_v0  ;;  %v1057_v57 = vmul.f32 %v2584_v2, %v2584_v2 }
 0x155   : > { %1821 = vmatprep.subr.mxu0 %v2563_v48  ;;  %1840 = vmatprep.subr.mxu1 %v2558_v60 }
 0x158   : > { %1822 = vmatpush3.xpose.msra.mxu0 %v2563_v48  ;;  %1841 = vmatpush3.xpose.msra.mxu1 %v2558_v60  ;;  %v1032_v60 = vmul.f32 %v2591_v4, %v2591_v4  ;;  %v1056_v48 = vmul.f32 %v2594_v19, %v2594_v19 }
 0x159   : > { %1823 = vmatprep.subr.mxu0 %v2572_v49  ;;  %1842 = vmatprep.subr.mxu1 %v2567_v61 }
 0x15c   : > { %1824 = vmatpush3.xpose.msra.mxu0 %v2572_v49  ;;  %1843 = vmatpush3.xpose.msra.mxu1 %v2567_v61  ;;  %v1055_v61 = vmul.f32 %v2601_v38, %v2601_v38  ;;  %v1054_v49 = vmul.f32 %v2611_v11, %v2611_v11 }
 0x15d   : > { %1825 = vmatprep.subr.mxu0 %v2581_v0  ;;  %1844 = vmatprep.subr.mxu1 %v2584_v2 }
 0x160   : > { %1826 = vmatpush3.xpose.msra.mxu0 %v2581_v0  ;;  %1845 = vmatpush3.xpose.msra.mxu1 %v2584_v2  ;;  %v1052_v0 = vmul.f32 %v2632_v26, %v2632_v26  ;;  %v1051_v2 = vmul.f32 %v2640_v29, %v2640_v29 }
 0x161   : > { %1827 = vmatprep.subr.mxu0 %v2591_v4  ;;  %1846 = vmatprep.subr.mxu1 %v2594_v19 }
 0x164   : > { %1828 = vmatpush3.xpose.msra.mxu0 %v2591_v4  ;;  %1847 = vmatpush3.xpose.msra.mxu1 %v2594_v19  ;;  %v1049_v4 = vmul.f32 %v2656_v47, %v2656_v47  ;;  %v1048_v19 = vmul.f32 %v2664_v51, %v2664_v51 }
 0x165   : > { %1848 = vmatprep.subr.mxu1 %v2601_v38  ;;  %1867 = vmatprep.subr.mxu0 %v2139_v7 }
 0x167   : > { %1830 = vmatmul.mubr.f32.vlgmr.msra.gmra.mxu0 %v222_v40 }
 0x168   : > { %1849 = vmatpush3.xpose.msra.mxu1 %v2601_v38  ;;  %1868 = vmatpush3.xpose.msra.mxu0 %v1031_v8  ;;  %v1274_v38 = vlaneseq }
 0x169   : > { %1850 = vmatprep.subr.mxu1 %v2611_v11  ;;  %1869 = vmatprep.subr.mxu0 %v2139_v7 }
 0x16a   : > { %1899 = vmatprep.mubr.msk.f32.mxu0 %vm2140_vm1, %v2139_v7  ;;  %v1275_v8 = vshrl.u32 %v1274_v38, 7 }
 0x16c   : > { %1851 = vmatpush3.xpose.msra.mxu1 %v2611_v11  ;;  %1870 = vmatpush3.xpose.msra.mxu0 %v1030_v17  ;;  %v2799_v14 = vsub.s32 0, %v1275_v8 }
 0x16d   : > { %1852 = vmatprep.subr.mxu1 %v2623_v20  ;;  %1871 = vmatprep.subr.mxu0 %v2139_v7 }
 0x170   : > { %1853 = vmatpush3.xpose.msra.mxu1 %v2623_v20  ;;  %1872 = vmatpush3.xpose.msra.mxu0 %v1029_v36 }
 0x171   : > { %1854 = vmatprep.subr.mxu1 %v2632_v26  ;;  %1873 = vmatprep.subr.mxu0 %v2139_v7 }
 0x174   : > { %1855 = vmatpush3.xpose.msra.mxu1 %v2632_v26  ;;  %1874 = vmatpush3.xpose.msra.mxu0 %v1028_v54 }
 0x175   : > { %1856 = vmatprep.subr.mxu1 %v2640_v29  ;;  %1875 = vmatprep.subr.mxu0 %v2139_v7 }
 0x178   : > { %1857 = vmatpush3.xpose.msra.mxu1 %v2640_v29  ;;  %1876 = vmatpush3.xpose.msra.mxu0 %v1027_v41 }
 0x179   : > { %1858 = vmatprep.subr.mxu1 %v2648_v58  ;;  %1877 = vmatprep.subr.mxu0 %v2139_v7 }
 0x17c   : > { %1859 = vmatpush3.xpose.msra.mxu1 %v2648_v58  ;;  %1878 = vmatpush3.xpose.msra.mxu0 %v1026_v46 }
 0x17d   : > { %1860 = vmatprep.subr.mxu1 %v2656_v47  ;;  %1879 = vmatprep.subr.mxu0 %v2139_v7 }
 0x180   : > { %1861 = vmatpush3.xpose.msra.mxu1 %v2656_v47  ;;  %1880 = vmatpush3.xpose.msra.mxu0 %v1025_v50 }
 0x181   : > { %1862 = vmatprep.subr.mxu1 %v2664_v51  ;;  %1881 = vmatprep.subr.mxu0 %v2139_v7 }
 0x184   : > { %1863 = vmatpush3.xpose.msra.mxu1 %v2664_v51  ;;  %1882 = vmatpush3.xpose.msra.mxu0 %v1024_v42 }
 0x185   : > { %1883 = vmatprep.subr.mxu0 %v2139_v7  ;;  %1902 = vmatprep.subr.mxu1 %v2139_v7 }
 0x187   : > { %1865 = vmatmul.mubr.f32.vlgmr.msra.gmra.mxu1 %v224_v3 }
 0x188   : > { %1884 = vmatpush3.xpose.msra.mxu0 %v1023_v44  ;;  %1903 = vmatpush3.xpose.msra.mxu1 %v1047_v55 }
 0x189   : > { %1885 = vmatprep.subr.mxu0 %v2139_v7  ;;  %1904 = vmatprep.subr.mxu1 %v2139_v7 }
 0x18a   : > { %1934 = vmatprep.mubr.msk.f32.mxu1 %vm2140_vm1, %v2139_v7 }
 0x18c   : > { %1886 = vmatpush3.xpose.msra.mxu0 %v1022_v59  ;;  %1905 = vmatpush3.xpose.msra.mxu1 %v1046_v63 }
 0x18d   : > { %1887 = vmatprep.subr.mxu0 %v2139_v7  ;;  %1906 = vmatprep.subr.mxu1 %v2139_v7 }
 0x190   : > { %1888 = vmatpush3.xpose.msra.mxu0 %v1021_v1  ;;  %1907 = vmatpush3.xpose.msra.mxu1 %v1045_v5 }
 0x191   : > { %1889 = vmatprep.subr.mxu0 %v2139_v7  ;;  %1908 = vmatprep.subr.mxu1 %v2139_v7 }
 0x194   : > { %1890 = vmatpush3.xpose.msra.mxu0 %v1020_v6  ;;  %1909 = vmatpush3.xpose.msra.mxu1 %v1044_v9 }
 0x195   : > { %1891 = vmatprep.subr.mxu0 %v2139_v7  ;;  %1910 = vmatprep.subr.mxu1 %v2139_v7 }
 0x198   : > { %1892 = vmatpush3.xpose.msra.mxu0 %v1019_v10  ;;  %1911 = vmatpush3.xpose.msra.mxu1 %v1043_v12 }
 0x199   : > { %1893 = vmatprep.subr.mxu0 %v2139_v7  ;;  %1912 = vmatprep.subr.mxu1 %v2139_v7 }
 0x19c   : > { %1894 = vmatpush3.xpose.msra.mxu0 %v1018_v13  ;;  %1913 = vmatpush3.xpose.msra.mxu1 %v1042_v15 }
 0x19d   : > { %1895 = vmatprep.subr.mxu0 %v2139_v7  ;;  %1914 = vmatprep.subr.mxu1 %v2139_v7 }
 0x1a0   : > { %1896 = vmatpush3.xpose.msra.mxu0 %v1017_v16  ;;  %1915 = vmatpush3.xpose.msra.mxu1 %v1041_v18 }
 0x1a1   : > { %1897 = vmatprep.subr.mxu0 %v2139_v7  ;;  %1916 = vmatprep.subr.mxu1 %v2139_v7 }
 0x1a4   : > { %1898 = vmatpush3.xpose.msra.mxu0 %v1016_v21  ;;  %1917 = vmatpush3.xpose.msra.mxu1 %v1040_v24  ;;  %v1005_v40 = vpop.xlane.xlu0 %1004 }
 0x1a5   : > { %1918 = vmatprep.subr.mxu1 %v2139_v7  ;;  %1937 = vmatprep.subr.mxu0 %v2139_v7 }
 0x1a7   : > { %1900 = vmatmul.mubr.f32.vlgmr.msra.gmra.mxu0 %v2141_v32 }
 0x1a8   : > { %1919 = vmatpush3.xpose.msra.mxu1 %v1039_v27  ;;  %1938 = vmatpush3.xpose.msra.mxu0 %v1063_v28  ;;  %v1007_v33 = vpop.xlane.xlu0 %1006 }
 0x1a9   : > { %1920 = vmatprep.subr.mxu1 %v2139_v7  ;;  %1939 = vmatprep.subr.mxu0 %v2139_v7 }
 0x1aa   : > { %1969 = vmatprep.mubr.msk.f32.mxu0 %vm2140_vm1, %v2139_v7 }
 0x1ac   : > { %1921 = vmatpush3.xpose.msra.mxu1 %v1038_v30  ;;  %1940 = vmatpush3.xpose.msra.mxu0 %v1062_v31  ;;  %v1009_v9 = vpop.xlane.xlu1 %1008 }
 0x1ad   : > { %1922 = vmatprep.subr.mxu1 %v2139_v7  ;;  %1941 = vmatprep.subr.mxu0 %v2139_v7 }
 0x1b0   : > { %1923 = vmatpush3.xpose.msra.mxu1 %v1037_v23  ;;  %1942 = vmatpush3.xpose.msra.mxu0 %v1061_v34 }
 0x1b1   : > { %1924 = vmatprep.subr.mxu1 %v2139_v7  ;;  %1943 = vmatprep.subr.mxu0 %v2139_v7 }
 0x1b3   : > { %v1011_v18 = vpop.xlane.xlu1 %1010 }
 0x1b4   : > { %1925 = vmatpush3.xpose.msra.mxu1 %v1036_v25  ;;  %1944 = vmatpush3.xpose.msra.mxu0 %v1060_v35 }
 0x1b5   : > { %1926 = vmatprep.subr.mxu1 %v2139_v7  ;;  %1945 = vmatprep.subr.mxu0 %v2139_v7 }
 0x1b8   : > { %1927 = vmatpush3.xpose.msra.mxu1 %v1035_v37  ;;  %1946 = vmatpush3.xpose.msra.mxu0 %v1059_v39 }
 0x1b9   : > { %1928 = vmatprep.subr.mxu1 %v2139_v7  ;;  %1947 = vmatprep.subr.mxu0 %v2139_v7 }
 0x1bc   : > { %1929 = vmatpush3.xpose.msra.mxu1 %v1034_v52  ;;  %1948 = vmatpush3.xpose.msra.mxu0 %v1058_v56 }
 0x1bd   : > { %1930 = vmatprep.subr.mxu1 %v2139_v7  ;;  %1949 = vmatprep.subr.mxu0 %v2139_v7 }
 0x1c0   : > { %1931 = vmatpush3.xpose.msra.mxu1 %v1033_v53  ;;  %1950 = vmatpush3.xpose.msra.mxu0 %v1057_v57 }
 0x1c1   : > { %1932 = vmatprep.subr.mxu1 %v2139_v7  ;;  %1951 = vmatprep.subr.mxu0 %v2139_v7 }
 0x1c4   : > { %1933 = vmatpush3.xpose.msra.mxu1 %v1032_v60  ;;  %1952 = vmatpush3.xpose.msra.mxu0 %v1056_v48 }
 0x1c5   : > { %1953 = vmatprep.subr.mxu0 %v2139_v7 }
 0x1c7   : > { %1935 = vmatmul.mubr.f32.vlgmr.msra.gmra.mxu1 %v2141_v32 }
 0x1c8   : > { %1954 = vmatpush3.xpose.msra.mxu0 %v1055_v61 }
 0x1c9   : > { %1955 = vmatprep.subr.mxu0 %v2139_v7 }
 0x1cc   : > { %1956 = vmatpush3.xpose.msra.mxu0 %v1054_v49 }
 0x1cd   : > { %1957 = vmatprep.subr.mxu0 %v2139_v7 }
 0x1d0   : > { %1958 = vmatpush3.xpose.msra.mxu0 %v1053_v43 }
 0x1d1   : > { %1959 = vmatprep.subr.mxu0 %v2139_v7 }
 0x1d4   : > { %1960 = vmatpush3.xpose.msra.mxu0 %v1052_v0  ;;  %v1015_v0 = vpop.xlane.xlu1 %1014 }
 0x1d5   : > { %1961 = vmatprep.subr.mxu0 %v2139_v7 }
 0x1d8   : > { %1962 = vmatpush3.xpose.msra.mxu0 %v1051_v2 }
 0x1d9   : > { %1963 = vmatprep.subr.mxu0 %v2139_v7 }
 0x1dc   : > { %1964 = vmatpush3.xpose.msra.mxu0 %v1050_v45  ;;  %v1013_v45 = vpop.xlane.xlu0 %1012 }
 0x1dd   : > { %1965 = vmatprep.subr.mxu0 %v2139_v7 }
 0x1e0   : > { %1966 = vmatpush3.xpose.msra.mxu0 %v1049_v4 }
 0x1e1   : > { %1967 = vmatprep.subr.mxu0 %v2139_v7 }
 0x1e4   : > { %1968 = vmatpush3.xpose.msra.mxu0 %v1048_v19 }
 0x1e7   : > { %1970 = vmatmul.mubr.f32.vlgmr.msra.gmra.mxu0 %v2141_v32 }
 0x207   : > { %v1796_v62 = vpop.f32.mrf.mxu1 }
 0x208   : > { %v1293_v22 = vmul.f32 2.0, %v1796_v62 }
 0x209   : > { %v839_v20 = vpop.f32.mrf.mxu1 }
 0x20a   : > { %v1292_v26 = vmul.f32 2.0, %v839_v20 }
 0x227   : > { %v1831_v11 = vpop.f32.mrf.mxu0 }
 0x228   : > { %v1295_v27 = vmul.f32 2.0, %v1831_v11 }
 0x229   : > { %v914_v17 = vpop.f32.mrf.mxu0 }
 0x22a   : > { %v1294_v28 = vmul.f32 2.0, %v914_v17 }
 0x247   : > { %v1866_v1 = vpop.f32.mrf.mxu1 }
 0x248   : > { %v1297_v38 = vmul.f32 2.0, %v1866_v1 }
 0x249   : > { %v989_v15 = vpop.f32.mrf.mxu1 }
 0x267   : > { %v1130_v3 = vpop.f32.mrf.mxu0 }
 0x268   : > { %v1277_v7 = vrot.slane %v1130_v3, %v2799_v14 }
 0x269   : > { %v1901_v36 = vpop.f32.mrf.mxu0 }
 0x26a   : > { %v1286_v54 = vadd.f32 %v1277_v7, %v1005_v40  ;;  %v1287_v29 = vadd.f32 %v1277_v7, %v1007_v33  ;;  %v1296_v40 = vmul.f32 2.0, %v989_v15 }
 0x26c   : > { %v1298_v41 = vsub.f32 %v1286_v54, %v1292_v26  ;;  %v1299_v58 = vsub.f32 %v1287_v29, %v1293_v22 }
 0x26e   : > { %v1304_v46 = vmax.f32 %v1298_v41, 0.0  ;;  %v1305_v47 = vmax.f32 %v1299_v58, 0.0 }
 0x270   : > { %2030 = vrsqrt.f32 %v1304_v46  ;;  %vm1312_vm2 = vcmp.eq.f32.partialorder %v1304_v46, inf  ;;  %v1315_v44 = vand.u32 2147483648, %v1304_v46  ;;  %vm1314_vm3 = vcmp.eq.f32.partialorder %v1304_v46, 0.0 }
 0x271   : > { %2032 = vrsqrt.f32 %v1305_v47  ;;  %vm1319_vm4 = vcmp.eq.f32.partialorder %v1305_v47, inf  ;;  %v1322_v63 = vand.u32 2147483648, %v1305_v47  ;;  %vm1321_vm5 = vcmp.eq.f32.partialorder %v1305_v47, 0.0 }
 0x27d   : > { %v2031_v50 = vpop.eup %2030 }
 0x27e   : > { %v2033_v51 = vpop.eup %2032  ;;  %v1311_v42 = vmul.f32 %v2031_v50, %v1304_v46 }
 0x27f   : > { %v1318_v55 = vmul.f32 %v2033_v51, %v1305_v47 }
 0x280   : > { %v1313_v59 = vsel %vm1312_vm2, %v1304_v46, %v1311_v42 }
 0x281   : > { %v1316_v5 = vsel %vm1314_vm3, %v1315_v44, %v1313_v59  ;;  %v1320_v6 = vsel %vm1319_vm4, %v1305_v47, %v1318_v55 }
 0x282   : > { %v1352_v10 = vsub.f32 0.0, %v1316_v5  ;;  %v1323_v12 = vsel %vm1321_vm5, %v1322_v63, %v1320_v6 }
 0x283   : > { %v1353_v13 = vsub.f32 0.0, %v1323_v12 }
 0x284   : > { %1358 = vst [vmem:[%s2803_s17] sm:$0xff] %v1352_v10 }
 0x285   : > { %1359 = vst [vmem:[%s2803_s17 + $0x8] sm:$0xff] %v1353_v13 }
 0x287   : > { %v1200_v16 = vpop.f32.mrf.mxu1 }
 0x288   : > { %v1281_v21 = vrot.slane %v1200_v16, %v2799_v14 }
 0x289   : > { %v1936_v24 = vpop.f32.mrf.mxu1 }
 0x28a   : > { %v1288_v32 = vadd.f32 %v1281_v21, %v1009_v9  ;;  %v1289_v30 = vadd.f32 %v1281_v21, %v1011_v18 }
 0x28c   : > { %v1300_v31 = vsub.f32 %v1288_v32, %v1294_v28  ;;  %v1301_v23 = vsub.f32 %v1289_v30, %v1295_v27 }
 0x28e   : > { %v1306_v34 = vmax.f32 %v1300_v31, 0.0  ;;  %v1307_v25 = vmax.f32 %v1301_v23, 0.0 }
 0x290   : > { %2034 = vrsqrt.f32 %v1306_v34  ;;  %vm1326_vm6 = vcmp.eq.f32.partialorder %v1306_v34, inf  ;;  %v1329_v52 = vand.u32 2147483648, %v1306_v34  ;;  %vm1328_vm7 = vcmp.eq.f32.partialorder %v1306_v34, 0.0 }
 0x291   : > { %2036 = vrsqrt.f32 %v1307_v25  ;;  %vm1333_vm8 = vcmp.eq.f32.partialorder %v1307_v25, inf  ;;  %v1336_v57 = vand.u32 2147483648, %v1307_v25  ;;  %vm1335_vm9 = vcmp.eq.f32.partialorder %v1307_v25, 0.0 }
 0x29d   : > { %v2035_v35 = vpop.eup %2034 }
 0x29e   : > { %v2037_v37 = vpop.eup %2036  ;;  %v1325_v39 = vmul.f32 %v2035_v35, %v1306_v34 }
 0x29f   : > { %v1332_v56 = vmul.f32 %v2037_v37, %v1307_v25 }
 0x2a0   : > { %v1327_v53 = vsel %vm1326_vm6, %v1306_v34, %v1325_v39 }
 0x2a1   : > { %v1330_v60 = vsel %vm1328_vm7, %v1329_v52, %v1327_v53  ;;  %v1334_v48 = vsel %vm1333_vm8, %v1307_v25, %v1332_v56 }
 0x2a2   : > { %v1354_v61 = vsub.f32 0.0, %v1330_v60  ;;  %v1337_v49 = vsel %vm1335_vm9, %v1336_v57, %v1334_v48 }
 0x2a3   : > { %v1355_v43 = vsub.f32 0.0, %v1337_v49 }
 0x2a4   : > { %1360 = vst [vmem:[%s2803_s17 + $0x10] sm:$0xff] %v1354_v61 }
 0x2a5   : > { %1361 = vst [vmem:[%s2803_s17 + $0x18] sm:$0xff] %v1355_v43 }
 0x2a7   : > { %v1270_v2 = vpop.f32.mrf.mxu0 }
 0x2a8   : > { %v1285_v4 = vrot.slane %v1270_v2, %v2799_v14 }
 0x2a9   : > { %v1971_v19 = vpop.f32.mrf.mxu0 }
 0x2aa   : > { %v1291_v8 = vadd.f32 %v1285_v4, %v1015_v0  ;;  %v1290_v11 = vadd.f32 %v1285_v4, %v1013_v45 }
 0x2ac   : > { %v1303_v62 = vsub.f32 %v1291_v8, %v1297_v38  ;;  %v1302_v17 = vsub.f32 %v1290_v11, %v1296_v40 }
 0x2ae   : > { %v1309_v33 = vmax.f32 %v1303_v62, 0.0  ;;  %v1308_v20 = vmax.f32 %v1302_v17, 0.0 }
 0x2b0   : > { %2038 = vrsqrt.f32 %v1309_v33  ;;  %vm1347_vm10 = vcmp.eq.f32.partialorder %v1309_v33, inf  ;;  %v1350_v22 = vand.u32 2147483648, %v1309_v33  ;;  %vm1349_vm11 = vcmp.eq.f32.partialorder %v1309_v33, 0.0 }
 0x2b1   : > { %2040 = vrsqrt.f32 %v1308_v20  ;;  %vm1340_vm12 = vcmp.eq.f32.partialorder %v1308_v20, inf  ;;  %v1343_v54 = vand.u32 2147483648, %v1308_v20  ;;  %vm1342_vm13 = vcmp.eq.f32.partialorder %v1308_v20, 0.0 }
 0x2bd   : > { %v2039_v3 = vpop.eup %2038 }
 0x2be   : > { %v2041_v7 = vpop.eup %2040  ;;  %v1346_v36 = vmul.f32 %v2039_v3, %v1309_v33 }
 0x2bf   : > { %v1339_v14 = vmul.f32 %v2041_v7, %v1308_v20 }
 0x2c0   : > { %v1348_v26 = vsel %vm1347_vm10, %v1309_v33, %v1346_v36 }
 0x2c1   : > { %v1351_v29 = vsel %vm1349_vm11, %v1350_v22, %v1348_v26  ;;  %v1341_v41 = vsel %vm1340_vm12, %v1308_v20, %v1339_v14 }
 0x2c2   : > { %v1357_v58 = vsub.f32 0.0, %v1351_v29  ;;  %v1344_v46 = vsel %vm1342_vm13, %v1343_v54, %v1341_v41 }
 0x2c3   : > { %v1356_v47 = vsub.f32 0.0, %v1344_v46 }
 0x2c4   : > { %1363 = vst [vmem:[%s2803_s17 + $0x28] sm:$0xff] %v1357_v58 }
 0x2c5   : > { %1362 = vst [vmem:[%s2803_s17 + $0x20] sm:$0xff] %v1356_v47 }
 0x2c6   : > { %2083 = shalt.err (!%p2080_p0)
}
 0x2c7   : > { %s2084_s8 = scalar_lea.hbm %s2816_s16, 768  ;;  %s2088_s4 = scalar_lea.hbm %s2866_s3, 1536 }
 0x2c8   : > { %p2085_p2 = scmp.ne.s32.totalorder %s2816_s16, %s2084_s8  ;;  %p2089_p3 = scmp.lt.s32.totalorder %s2816_s16, %s2866_s3 }
 0x2c9   : > { %p2090_p6 = scmp.lt.s32.totalorder %s2088_s4, %s2084_s8 }
 0x2ca   : > { %p2086_p9 = pnand %p2085_p2, %p2874_p13 }
 0x2cb   : > { %p2091_p11 = por %p2090_p6, %p2089_p3 }
 0x2cc   : > { %p2087_p1 = pneg %p2086_p9 }
 0x2ce   : > { %p2092_p12 = pnand %p2091_p11, %p2087_p1 }
 0x2d0   : > { %2095 = shalt.err (!%p2092_p12)
}
 0x2d1   : > { %s2143_s11 = smov 128   ;;  %s2144_s17 = smov 8  }
 0x2d2   : > { %1979 = dma.vmem_to_hbm [thread:$0]  (%p2874_p13), %s2818_s22, 768, %s2816_s16, %s1365_s25, %s2143_s11, %s2143_s11, %s2144_s17  }
 0x2d3 PF: > { %s1394_s10 = sand.u32 1, %s2122_s12   ;;  %p2875_p4 = scmp.ne.s32.totalorder %s2871_s24, 0 }
 0x2d4   : > { %p2876_p5 = scmp.ge.s32.totalorder %s2134_s15, 2  ;;  %s1395_s19 = scalar_lea.sflag [#allocation4], %s1394_s10 }
 0x2d6   : > { %p1986_p7 = pnand %p2876_p5, %p2875_p4 }
 0x2d8   : > { %p1987_p8 = pneg %p1986_p7 }
 0x2da   : > { %2117 = dma.done.wait (%p1987_p8), %s1395_s19, 768  }
 0x2db   : > { %2119 = vsyncadd (%p1987_p8), %s1395_s19, 4294966528  ;;  %p16_p10 = scmp.ge.s32.totalorder %s2190_s18, 4   ;;  %s2877_s12 = smov %s2126_s13 }
 0x2dc   : > { %s2878_s13 = smov %s2130_s14  ;;  %s2879_s14 = smov %s2202_s21 }
 0x2dd   : > { %s2880_s15 = smov %s2190_s18  ;;  %18 = sbr.rel (!%p16_p10) target bundleno = 5 (0x5), region = 80 }
 0x2e2   :  { %1400 = vsyncpa [#allocation3], 1 }
 0x2e3   :  { %1402 = vsyncpa [#allocation3 + $0x1], 1 }
 0x2e4   :  { %1403 = vsyncpa [#allocation4], 1 }
 0x2e5   :  { %1405 = vsyncpa [#allocation4 + $0x1], 1 }

</bundles_post_ra>
